<compile_context>
chip_gen: v7x
topology: tpu7x:2x2x1
jax: 0.10.0
libtpu: 0.0.40
codegen_flags: <defaults>
</compile_context>

<pallas_src>
import functools

import jax
import jax.numpy as jnp
from jax.experimental import pallas as pl
from jax.experimental.pallas import tpu as pltpu


def _round_up(x, m):
    return -(-x // m) * m


def _recon_loss_kernel(gt_ref, rec_ref, out_ref, *, h, w, hw):
    """One grid step handles `nb` whole samples as dense (nb, C*H*W) rows.

    Writes three partial sums into this step's own (1, 8, 128) output block:
      row 0: sum |e|                     (L1 pixel-loss numerator)
      row 1: sum |e_dx| + sum |e_dy|     (GDL numerator; tf image_gradients
                                          zero-pad semantics -> missing last
                                          image row / column contribute 0)
      row 2: sum_b sqrt(sum_hw d_b^2)    (deep-SESR color-loss numerator)
    """
    chw = gt_ref.shape[-1]
    gt = gt_ref[...].astype(jnp.float32)      # (nb, CHW)
    rec = rec_ref[...].astype(jnp.float32)
    e = gt - rec
    ae = jnp.abs(e)                           # reused by L1 and color terms

    # ---- L1 pixel-loss partial ----
    l1 = jnp.sum(ae)

    # ---- GDL gradient-loss partial, from gradients of e ----
    # One (1, CHW) iota row; rolling it alongside e yields the partner index
    # of every lane, from which cheap, direction-agnostic validity masks are
    # built and broadcast across the batch sublanes.
    p = jax.lax.broadcasted_iota(jnp.int32, (1, chw), 1)
    gdl = jnp.float32(0.0)
    if w > 1:
        e_x = pltpu.roll(e, chw - 1, 1)       # horizontal neighbour (+/-1)
        p_x = pltpu.roll(p, chw - 1, 1)
        lo = jnp.minimum(p, p_x)
        mx = ((jnp.abs(p_x - p) == 1) & (lo % w != w - 1)).astype(jnp.float32)
        gdl = gdl + jnp.sum(jnp.abs(e_x - e) * mx)
    if h > 1:
        e_y = pltpu.roll(e, chw - w, 1)       # vertical neighbour (+/-W)
        p_y = pltpu.roll(p, chw - w, 1)
        lo = jnp.minimum(p, p_y)
        # same channel + not the last image row (also kills roll wrap-around)
        my = ((jnp.abs(p_y - p) == w) & (lo % hw < hw - w)).astype(jnp.float32)
        gdl = gdl + jnp.sum(jnp.abs(e_y - e) * my)

    # ---- deep-SESR color loss: per-sample L2 norm of d, summed over block ----
    # Channel slices are contiguous lane slices in the dense layout.
    dr = ae[:, 0 * hw:1 * hw]
    dg = ae[:, 1 * hw:2 * hw]
    db = ae[:, 2 * hw:3 * hw]
    d = 4.0 * (dr - dg) ** 2 + (dr + dg - 2.0 * db) ** 2          # (nb, HW)
    # (The large lane reductions here/above could be pushed onto the idle MXU
    #  via a dot with a ones vector; kept on the XLU for simplicity.)
    d2 = jnp.sum(d * d, axis=-1, keepdims=True)                   # (nb, 1)
    color = jnp.sum(jnp.sqrt(d2))

    # Full, unmasked lane-dense (8, 128) store: rows 0/1/2 carry the partials.
    row = jax.lax.broadcasted_iota(jnp.int32, (8, 128), 0)
    out_ref[0] = jnp.where(row == 0, l1, jnp.where(row == 1, gdl, color))


def _vmem_limit_bytes():
    # <= 48 MiB on v7x (64 MiB physical), 64 MiB on v5e/v6e (128 MiB physical).
    try:
        cap = int(pltpu.get_tpu_info().vmem_capacity_bytes)
    except Exception:
        cap = 64 * 1024 * 1024   # conservative (v7x-sized) fallback
    return min((cap * 3) // 4, 64 * 1024 * 1024)


def _loss_components(gt, rec):
    B, C, H, W = gt.shape
    assert C == 3, "color loss requires 3 channels (RGB)"
    HW = H * W
    CHW = C * HW

    # Fully dense 2-D view (free reshape of a contiguous array): no channel
    # sublane padding, lanes fully used regardless of W.
    gt_f = gt.reshape(B, CHW)
    rec_f = rec.reshape(B, CHW)

    # --- batch-tile selection from the real VMEM live set ---
    # live set ~= 2 inputs x 2 pipeline buffers x input tile
    #             + ~5 f32 tile-sized intermediates (e, ae, rolls, masked |.|, d)
    vmem_limit = _vmem_limit_bytes()
    budget = (vmem_limit * 3) // 4                    # headroom inside the limit
    in_item = int(jnp.dtype(gt.dtype).itemsize)
    per_row = CHW * (4 * in_item + 5 * 4)
    sub = max(8, 32 // in_item)                       # sublane packing multiple
    nb = budget // per_row
    nb = max(sub, (nb // sub) * sub)
    # Keep >= 2 grid steps (both v7x TensorCores) once the batch is big enough.
    cap = max(sub, (pl.cdiv(B, 2) // sub) * sub)
    nb = min(nb, cap)
    # TODO(synk): a single image larger than the per-row VMEM budget would need
    # spatial row-tiling with a one-row halo for dy; not implemented here.

    n_steps = pl.cdiv(B, nb)
    b_pad = n_steps * nb
    if b_pad != B:
        # Zero-padded samples contribute exactly 0 to every partial sum.
        gt_f = jnp.pad(gt_f, ((0, b_pad - B), (0, 0)))
        rec_f = jnp.pad(rec_f, ((0, b_pad - B), (0, 0)))

    kernel = functools.partial(_recon_loss_kernel, h=H, w=W, hw=HW)
    partials = pl.pallas_call(
        kernel,
        out_shape=jax.ShapeDtypeStruct((n_steps, 8, 128), jnp.float32),
        grid_spec=pl.GridSpec(
            grid=(n_steps,),
            in_specs=[
                pl.BlockSpec((nb, CHW), lambda i: (i, 0)),
                pl.BlockSpec((nb, CHW), lambda i: (i, 0)),
            ],
            out_specs=pl.BlockSpec((1, 8, 128), lambda i: (i, 0, 0)),
        ),
        compiler_params=pltpu.CompilerParams(
            dimension_semantics=("parallel",),
            vmem_limit_bytes=vmem_limit,
        ),
    )(gt_f, rec_f)

    # Tiny final reduction + normalization in plain JAX (true B, not padded B).
    n_total = float(B * C * H * W)
    rec_loss = jnp.sum(partials[:, 0, 0]) / n_total
    gdl_loss = jnp.sum(partials[:, 1, 0]) / n_total
    color_loss = jnp.sum(partials[:, 2, 0]) / float(B)
    return rec_loss, gdl_loss, color_loss


def reconstruction_loss(
    gt,
    reconstructions,
    optimizer_idx=0,
    global_step=0,
    last_layer=None,
    cond=None,
    split="train",
    pixelloss_weight=1.0,
    perceptual_weight=1.0,
    gdl_loss_weight=1.0,
    color_loss_weight=0.0,
    ssim_loss_weight=0.0,
):
    rec_loss, gdl_loss, color_loss = _loss_components(gt, reconstructions)

    # TODO(synk): LPIPS perceptual loss needs a pretrained VGG16 feature stack; no faithful in-script equivalent, so p_loss = 0.
    p_loss = jnp.float32(0.0)
    # TODO(synk): ms_ssim (multi-scale SSIM, default weight 0.0) omitted; ssim_loss term contributes 0.
    ssim_loss = jnp.float32(0.0)

    loss = (
        pixelloss_weight * rec_loss
        + perceptual_weight * p_loss
        + gdl_loss_weight * gdl_loss
        + color_loss_weight * color_loss
        + ssim_loss_weight * ssim_loss
    )
    log = {
        f"{split}/total_loss": loss,
        f"{split}/rec_loss": rec_loss,
        f"{split}/gdl_loss": gdl_loss,
        f"{split}/p_loss": p_loss,
        f"{split}/color_loss": color_loss,
        f"{split}/ssim_loss": ssim_loss,
    }
    return loss, log


def _reference_components(gt, rec):
    """Plain-JAX reference of the three Pallas-computed terms."""
    rec_loss = jnp.mean(jnp.abs(gt - rec))

    def grads(x):
        dx = x[:, :, :, 1:] - x[:, :, :, :-1]
        dy = x[:, :, 1:, :] - x[:, :, :-1, :]
        dx = jnp.pad(dx, ((0, 0), (0, 0), (0, 0), (0, 1)))
        dy = jnp.pad(dy, ((0, 0), (0, 0), (0, 1), (0, 0)))
        return dx, dy

    gdx, gdy = grads(rec)
    tdx, tdy = grads(gt)
    gdl_loss = jnp.mean(jnp.abs(tdx - gdx) + jnp.abs(tdy - gdy))

    dr = jnp.abs(rec[:, 0] - gt[:, 0])
    dg = jnp.abs(rec[:, 1] - gt[:, 1])
    db = jnp.abs(rec[:, 2] - gt[:, 2])
    d = 4.0 * (dr - dg) ** 2 + (dr + dg - 2.0 * db) ** 2
    color_loss = jnp.mean(jnp.sqrt(jnp.sum(d * d, axis=(1, 2))))
    return rec_loss, gdl_loss, color_loss


if __name__ == "__main__":
    key = jax.random.PRNGKey(0)
    k1, k2 = jax.random.split(key)
    B, C, H, W = 2, 3, 16, 16
    # inputs in [-1, 1], as the module expects (it maps to [0, 1] for ssim)
    gt = jnp.tanh(jax.random.normal(k1, (B, C, H, W), dtype=jnp.float32))
    rec = jnp.tanh(jax.random.normal(k2, (B, C, H, W), dtype=jnp.float32))

    loss, log = reconstruction_loss(gt, rec)
    loss = jax.block_until_ready(loss)

    # sanity check against plain-JAX reference
    r_rec, r_gdl, r_color = _reference_components(gt, rec)
    assert jnp.allclose(log["train/rec_loss"], r_rec, atol=1e-5)
    assert jnp.allclose(log["train/gdl_loss"], r_gdl, atol=1e-5)
    assert jnp.allclose(log["train/color_loss"], r_color, atol=1e-4)
    assert jnp.allclose(loss, 1.0 * r_rec + 1.0 * r_gdl + 0.0 * r_color, atol=1e-5)

    print("KERNEL_OK")
</pallas_src>

<mosaic_0001>
module attributes {stable_mosaic.version = 11 : i64} {
  func.func @_recon_loss_kernel(%arg0: i32, %arg1: memref<8x768xf32, #tpu.memory_space<vmem>>, %arg2: memref<8x768xf32, #tpu.memory_space<vmem>>, %arg3: memref<1x8x128xf32, #tpu.memory_space<vmem>>) attributes {dimension_semantics = [#tpu.dimension_semantics<parallel>], iteration_bounds = array<i64: 1>, scalar_prefetch = 0 : i64, scratch_operands = 0 : i64, tpu.core_type = #tpu.core_type<tc>, window_params = [{transform_indices = @transform_0, window_bounds = array<i64: 8, 768>}, {transform_indices = @transform_1, window_bounds = array<i64: 8, 768>}, {transform_indices = @transform_2, window_bounds = array<i64: 1, 8, 128>}]} {
    %c0 = arith.constant 0 : index
    %c0_0 = arith.constant 0 : index
    %0 = vector.load %arg1[%c0, %c0_0] : memref<8x768xf32, #tpu.memory_space<vmem>>, vector<8x768xf32>
    %c0_1 = arith.constant 0 : index
    %c0_2 = arith.constant 0 : index
    %1 = vector.load %arg2[%c0_1, %c0_2] : memref<8x768xf32, #tpu.memory_space<vmem>>, vector<8x768xf32>
    %2 = arith.subf %0, %1 : vector<8x768xf32>
    %3 = math.absf %2 : vector<8x768xf32>
    %4 = vector.shape_cast %3 : vector<8x768xf32> to vector<1x8x768xf32>
    %cst = arith.constant dense<0.000000e+00> : vector<1xf32>
    %5 = vector.multi_reduction <add>, %4, %cst [1, 2] : vector<1x8x768xf32> to vector<1xf32>
    %6 = vector.shape_cast %5 : vector<1xf32> to vector<1x1x1xf32>
    %7 = vector.extract %6[0, 0, 0] : f32 from vector<1x1x1xf32>
    %8 = tpu.iota {dimensions = array<i32: 1>} : vector<1x768xi32>
    %c767_i32 = arith.constant 767 : i32
    %9 = tpu.dynamic_rotate %2 by %c767_i32 dim 1 : vector<8x768xf32>, i32 -> vector<8x768xf32>
    %c767_i32_3 = arith.constant 767 : i32
    %10 = tpu.dynamic_rotate %8 by %c767_i32_3 dim 1 : vector<1x768xi32>, i32 -> vector<1x768xi32>
    %11 = arith.minsi %8, %10 : vector<1x768xi32>
    %12 = arith.subi %10, %8 : vector<1x768xi32>
    %13 = math.absi %12 : vector<1x768xi32>
    %c1_i32 = arith.constant 1 : i32
    %14 = vector.broadcast %c1_i32 : i32 to vector<1x768xi32>
    %15 = arith.cmpi eq, %13, %14 : vector<1x768xi32>
    %c16_i32 = arith.constant 16 : i32
    %c0_i32 = arith.constant 0 : i32
    %16 = arith.cmpi eq, %c16_i32, %c0_i32 : i32
    %c1_i32_4 = arith.constant 1 : i32
    %17 = arith.select %16, %c1_i32_4, %c16_i32 : i32
    %18 = vector.broadcast %17 : i32 to vector<1x768xi32>
    %19 = arith.remsi %11, %18 : vector<1x768xi32>
    %c0_i32_5 = arith.constant 0 : i32
    %20 = vector.broadcast %c0_i32_5 : i32 to vector<1x768xi32>
    %21 = arith.cmpi ne, %19, %20 : vector<1x768xi32>
    %c0_i32_6 = arith.constant 0 : i32
    %22 = vector.broadcast %c0_i32_6 : i32 to vector<1x768xi32>
    %23 = arith.cmpi slt, %19, %22 : vector<1x768xi32>
    %c0_i32_7 = arith.constant 0 : i32
    %24 = arith.cmpi slt, %17, %c0_i32_7 : i32
    %25 = vector.broadcast %24 : i1 to vector<1x768xi1>
    %26 = vector.broadcast %25 : vector<1x768xi1> to vector<1x768xi1>
    %27 = arith.xori %23, %26 : vector<1x768xi1>
    %28 = arith.andi %27, %21 : vector<1x768xi1>
    %29 = vector.broadcast %17 : i32 to vector<1x768xi32>
    %30 = arith.addi %19, %29 : vector<1x768xi32>
    %31 = arith.select %28, %30, %19 : vector<1x768xi1>, vector<1x768xi32>
    %c15_i32 = arith.constant 15 : i32
    %32 = vector.broadcast %c15_i32 : i32 to vector<1x768xi32>
    %33 = arith.cmpi ne, %31, %32 : vector<1x768xi32>
    %34 = arith.andi %15, %33 : vector<1x768xi1>
    %35 = arith.extui %34 : vector<1x768xi1> to vector<1x768xi32>
    %36 = arith.sitofp %35 : vector<1x768xi32> to vector<1x768xf32>
    %37 = arith.subf %9, %2 : vector<8x768xf32>
    %38 = math.absf %37 : vector<8x768xf32>
    %39 = vector.broadcast %36 : vector<1x768xf32> to vector<8x768xf32>
    %40 = arith.mulf %38, %39 : vector<8x768xf32>
    %41 = vector.shape_cast %40 : vector<8x768xf32> to vector<1x8x768xf32>
    %cst_8 = arith.constant dense<0.000000e+00> : vector<1xf32>
    %42 = vector.multi_reduction <add>, %41, %cst_8 [1, 2] : vector<1x8x768xf32> to vector<1xf32>
    %43 = vector.shape_cast %42 : vector<1xf32> to vector<1x1x1xf32>
    %44 = vector.extract %43[0, 0, 0] : f32 from vector<1x1x1xf32>
    %cst_9 = arith.constant 0.000000e+00 : f32
    %45 = arith.addf %cst_9, %44 : f32
    %c752_i32 = arith.constant 752 : i32
    %46 = tpu.dynamic_rotate %2 by %c752_i32 dim 1 : vector<8x768xf32>, i32 -> vector<8x768xf32>
    %c752_i32_10 = arith.constant 752 : i32
    %47 = tpu.dynamic_rotate %8 by %c752_i32_10 dim 1 : vector<1x768xi32>, i32 -> vector<1x768xi32>
    %48 = arith.minsi %8, %47 : vector<1x768xi32>
    %49 = arith.subi %47, %8 : vector<1x768xi32>
    %50 = math.absi %49 : vector<1x768xi32>
    %c16_i32_11 = arith.constant 16 : i32
    %51 = vector.broadcast %c16_i32_11 : i32 to vector<1x768xi32>
    %52 = arith.cmpi eq, %50, %51 : vector<1x768xi32>
    %c256_i32 = arith.constant 256 : i32
    %c0_i32_12 = arith.constant 0 : i32
    %53 = arith.cmpi eq, %c256_i32, %c0_i32_12 : i32
    %c1_i32_13 = arith.constant 1 : i32
    %54 = arith.select %53, %c1_i32_13, %c256_i32 : i32
    %55 = vector.broadcast %54 : i32 to vector<1x768xi32>
    %56 = arith.remsi %48, %55 : vector<1x768xi32>
    %c0_i32_14 = arith.constant 0 : i32
    %57 = vector.broadcast %c0_i32_14 : i32 to vector<1x768xi32>
    %58 = arith.cmpi ne, %56, %57 : vector<1x768xi32>
    %c0_i32_15 = arith.constant 0 : i32
    %59 = vector.broadcast %c0_i32_15 : i32 to vector<1x768xi32>
    %60 = arith.cmpi slt, %56, %59 : vector<1x768xi32>
    %c0_i32_16 = arith.constant 0 : i32
    %61 = arith.cmpi slt, %54, %c0_i32_16 : i32
    %62 = vector.broadcast %61 : i1 to vector<1x768xi1>
    %63 = vector.broadcast %62 : vector<1x768xi1> to vector<1x768xi1>
    %64 = arith.xori %60, %63 : vector<1x768xi1>
    %65 = arith.andi %64, %58 : vector<1x768xi1>
    %66 = vector.broadcast %54 : i32 to vector<1x768xi32>
    %67 = arith.addi %56, %66 : vector<1x768xi32>
    %68 = arith.select %65, %67, %56 : vector<1x768xi1>, vector<1x768xi32>
    %c240_i32 = arith.constant 240 : i32
    %69 = vector.broadcast %c240_i32 : i32 to vector<1x768xi32>
    %70 = arith.cmpi slt, %68, %69 : vector<1x768xi32>
    %71 = arith.andi %52, %70 : vector<1x768xi1>
    %72 = arith.extui %71 : vector<1x768xi1> to vector<1x768xi32>
    %73 = arith.sitofp %72 : vector<1x768xi32> to vector<1x768xf32>
    %74 = arith.subf %46, %2 : vector<8x768xf32>
    %75 = math.absf %74 : vector<8x768xf32>
    %76 = vector.broadcast %73 : vector<1x768xf32> to vector<8x768xf32>
    %77 = arith.mulf %75, %76 : vector<8x768xf32>
    %78 = vector.shape_cast %77 : vector<8x768xf32> to vector<1x8x768xf32>
    %cst_17 = arith.constant dense<0.000000e+00> : vector<1xf32>
    %79 = vector.multi_reduction <add>, %78, %cst_17 [1, 2] : vector<1x8x768xf32> to vector<1xf32>
    %80 = vector.shape_cast %79 : vector<1xf32> to vector<1x1x1xf32>
    %81 = vector.extract %80[0, 0, 0] : f32 from vector<1x1x1xf32>
    %82 = arith.addf %45, %81 : f32
    %83 = vector.extract_strided_slice %3 {offsets = [0, 0], sizes = [8, 256], strides = [1, 1]} : vector<8x768xf32> to vector<8x256xf32>
    %84 = vector.extract_strided_slice %3 {offsets = [0, 256], sizes = [8, 256], strides = [1, 1]} : vector<8x768xf32> to vector<8x256xf32>
    %85 = vector.extract_strided_slice %3 {offsets = [0, 512], sizes = [8, 256], strides = [1, 1]} : vector<8x768xf32> to vector<8x256xf32>
    %86 = arith.subf %83, %84 : vector<8x256xf32>
    %87 = arith.mulf %86, %86 : vector<8x256xf32>
    %cst_18 = arith.constant 4.000000e+00 : f32
    %88 = vector.broadcast %cst_18 : f32 to vector<8x256xf32>
    %89 = arith.mulf %88, %87 : vector<8x256xf32>
    %90 = arith.addf %83, %84 : vector<8x256xf32>
    %cst_19 = arith.constant 2.000000e+00 : f32
    %91 = vector.broadcast %cst_19 : f32 to vector<8x256xf32>
    %92 = arith.mulf %91, %85 : vector<8x256xf32>
    %93 = arith.subf %90, %92 : vector<8x256xf32>
    %94 = arith.mulf %93, %93 : vector<8x256xf32>
    %95 = arith.addf %89, %94 : vector<8x256xf32>
    %96 = arith.mulf %95, %95 : vector<8x256xf32>
    %cst_20 = arith.constant dense<0.000000e+00> : vector<8xf32>
    %97 = vector.multi_reduction <add>, %96, %cst_20 [1] : vector<8x256xf32> to vector<8xf32>
    %98 = vector.shape_cast %97 : vector<8xf32> to vector<8x1xf32>
    %99 = math.sqrt %98 : vector<8x1xf32>
    %100 = vector.shape_cast %99 : vector<8x1xf32> to vector<1x8x1xf32>
    %cst_21 = arith.constant dense<0.000000e+00> : vector<1xf32>
    %101 = vector.multi_reduction <add>, %100, %cst_21 [1, 2] : vector<1x8x1xf32> to vector<1xf32>
    %102 = vector.shape_cast %101 : vector<1xf32> to vector<1x1x1xf32>
    %103 = vector.extract %102[0, 0, 0] : f32 from vector<1x1x1xf32>
    %104 = tpu.iota {dimensions = array<i32: 0>} : vector<8x128xi32>
    %c0_i32_22 = arith.constant 0 : i32
    %105 = vector.broadcast %c0_i32_22 : i32 to vector<8x128xi32>
    %106 = arith.cmpi eq, %104, %105 : vector<8x128xi32>
    %c1_i32_23 = arith.constant 1 : i32
    %107 = vector.broadcast %c1_i32_23 : i32 to vector<8x128xi32>
    %108 = arith.cmpi eq, %104, %107 : vector<8x128xi32>
    %109 = vector.broadcast %82 : f32 to vector<8x128xf32>
    %110 = vector.broadcast %103 : f32 to vector<8x128xf32>
    %111 = arith.select %108, %109, %110 : vector<8x128xi1>, vector<8x128xf32>
    %112 = vector.broadcast %7 : f32 to vector<8x128xf32>
    %113 = arith.select %106, %112, %111 : vector<8x128xi1>, vector<8x128xf32>
    %c0_24 = arith.constant 0 : index
    %c0_25 = arith.constant 0 : index
    %c0_26 = arith.constant 0 : index
    %114 = vector.load %arg3[%c0_24, %c0_25, %c0_26] : memref<1x8x128xf32, #tpu.memory_space<vmem>>, vector<1x8x128xf32>
    %115 = vector.shape_cast %114 : vector<1x8x128xf32> to vector<8x128xf32>
    %116 = vector.shape_cast %113 : vector<8x128xf32> to vector<1x8x128xf32>
    tpu.vector_store %arg3[%c0_24, %c0_25, %c0_26], %116 {strides = array<i32>} : memref<1x8x128xf32, #tpu.memory_space<vmem>>, vector<1x8x128xf32>,
    return
  }
  func.func @transform_0(%arg0: i32) -> (i32, i32) {
    %c0_i32 = arith.constant 0 : i32
    %c0_i32_0 = arith.constant 0 : i32
    return %arg0, %c0_i32 : i32, i32
  }
  func.func @transform_1(%arg0: i32) -> (i32, i32) {
    %c0_i32 = arith.constant 0 : i32
    %c0_i32_0 = arith.constant 0 : i32
    return %arg0, %c0_i32 : i32, i32
  }
  func.func @transform_2(%arg0: i32) -> (i32, i32, i32) {
    %c0_i32 = arith.constant 0 : i32
    %c0_i32_0 = arith.constant 0 : i32
    %c0_i32_1 = arith.constant 0 : i32
    return %arg0, %c0_i32, %c0_i32_0 : i32, i32, i32
  }
}

</mosaic_0001>

<bundles_post_ra>
// kernel: tpu_custom_call.1
= control target key start
LH: loop header
LB: loop body
LE: loop exit
PB: predicated region body
PF: predicated region fallthrough
CT: control target
= control target key end

     0   :  { %7 = vsyncpa [#allocation3], 0  ;;  %s1524_s0 = inlined_call_operand.hbm [shape: f32[8,768], index: 0, kind: input, shape index: {}]   ;;  %s1525_s1 = inlined_call_operand.hbm [shape: f32[8,768], index: 1, kind: input, shape index: {}]   ;;  %s1526_s2 = inlined_call_operand.hbm [shape: f32[1,8,128], index: 2, kind: output, shape index: {}]  }
   0x1   :  { %8 = vsyncpa [#allocation6], 0 }
   0x2   :  { %9 = vsyncpa [#allocation4], 0  ;;  %s734_s9 = smov [#allocation2]   ;;  %s735_s11 = smov [#allocation5]  }
   0x3   :  { %s16_s10 = sshll.u32 %s734_s9, 4  ;;  %s26_s12 = sshll.u32 %s735_s11, 4  ;;  %s17_s10 = int_to_ptr.vmem [resolvable:$true] %s16_s10  ;;  %s27_s12 = int_to_ptr.vmem [resolvable:$true] %s26_s12 }
   0x4   :  { %s662_s15 = scalar_lea.hbm %s1524_s0, 768 }
   0x5   :  { %p663_p0 = scmp.ne.s32.totalorder %s1524_s0, %s662_s15  ;;  %p666_p1 = scmp.lt.u32.totalorder %s662_s15, %s1524_s0 }
   0x7   :  { %p668_p2 = pnand %p666_p1, %p663_p0 }
   0x9   :  { %671 = shalt.err (!%p668_p2)
}
   0xa   :  { %s672_s20 = scalar_lea.vmem %s17_s10, 768  ;;  %p677_p4 = scmp.lt.s32.totalorder %s17_s10, %s17_s10 }
   0xb   :  { %p673_p3 = scmp.ne.s32.totalorder %s17_s10, %s672_s20  ;;  %p678_p5 = scmp.lt.s32.totalorder %s672_s20, %s672_s20 }
   0xd   :  { %p679_p6 = por %p678_p5, %p677_p4 }
   0xf   :  { %p680_p7 = pnand %p679_p6, %p673_p3 }
  0x11   :  { %683 = shalt.err (!%p680_p7)
}
  0x12   :  { %19 = dma.hbm_to_vmem [thread:$0]  %s1524_s0, 768, %s17_s10, [#allocation3]  }
  0x13   :  { %s684_s25 = scalar_lea.hbm %s1525_s1, 768 }
  0x14   :  { %p685_p8 = scmp.ne.s32.totalorder %s1525_s1, %s684_s25  ;;  %p688_p9 = scmp.lt.u32.totalorder %s684_s25, %s1525_s1 }
  0x16   :  { %p690_p10 = pnand %p688_p9, %p685_p8 }
  0x18   :  { %693 = shalt.err (!%p690_p10)
}
  0x19   :  { %s694_s30 = scalar_lea.vmem %s27_s12, 768  ;;  %p699_p12 = scmp.lt.s32.totalorder %s27_s12, %s27_s12 }
  0x1a   :  { %p695_p11 = scmp.ne.s32.totalorder %s27_s12, %s694_s30  ;;  %p700_p13 = scmp.lt.s32.totalorder %s694_s30, %s694_s30 }
  0x1c   :  { %p701_p0 = por %p700_p13, %p699_p12 }
  0x1e   :  { %p702_p1 = pnand %p701_p0, %p695_p11 }
  0x20   :  { %705 = shalt.err (!%p702_p1)
}
  0x21   :  { %29 = dma.hbm_to_vmem [thread:$0]  %s1525_s1, 768, %s27_s12, [#allocation6]  }
  0x22   :  { %728 = dma.done.wait [#allocation3], 768  }
  0x23   :  { %729 = vsyncadd [#allocation3], 4294966528  ;;  %v74_v0 = vlaneseq }
  0x24   :  { %730 = dma.done.wait [#allocation6], 768  }
  0x25   :  { %731 = vsyncadd [#allocation6], 4294966528  ;;  %v780_v1 = vand.u32 127, %v74_v0  ;;  %s736_s4 = smov 112   ;;  %s737_s5 = smov 127   ;;  %v37_v5 = vld [vmem:[#allocation2 + $0x8] sm:$0xff] }
  0x26   :  { %v43_v6 = vld [vmem:[#allocation5 + $0x8] sm:$0xff]  ;;  %v38_v7 = vld [vmem:[#allocation2 + $0x10] sm:$0xff]  ;;  %v44_v8 = vld [vmem:[#allocation5 + $0x10] sm:$0xff]  ;;  %s739_s9 = smov [#allocation7]  }
  0x27   :  { %332 = vrot.lane.b32.xlu1 %v780_v1, %s736_s4  ;;  %100 = vrot.lane.b32.xlu0 %v780_v1, %s737_s5  ;;  %v787_v2 = vadd.s32 256, %v780_v1  ;;  %v790_v3 = vadd.s32 128, %v780_v1  ;;  %v801_v4 = vadd.s32 384, %v780_v1  ;;  %v39_v9 = vld [vmem:[#allocation2 + $0x18] sm:$0xff]  ;;  %v40_v10 = vld [vmem:[#allocation2 + $0x20] sm:$0xff]  ;;  %v41_v11 = vld [vmem:[#allocation2 + $0x28] sm:$0xff]  ;;  %v810_v18 = vsub.f32 %v37_v5, %v43_v6 }
  0x28   :  { %v808_v12 = vadd.s32 512, %v780_v1  ;;  %v45_v13 = vld [vmem:[#allocation5 + $0x18] sm:$0xff]  ;;  %v46_v14 = vld [vmem:[#allocation5 + $0x20] sm:$0xff]  ;;  %v47_v15 = vld [vmem:[#allocation5 + $0x28] sm:$0xff]  ;;  %v812_v19 = vsub.f32 %v38_v7, %v44_v8  ;;  %v825_v23 = vadd.s32 640, %v780_v1  ;;  %vm1527_vm0 = vcmp.lt.s32.totalorder %v780_v1, 127 }
  0x29   :  { %v36_v16 = vld [vmem:[#allocation2] sm:$0xff]  ;;  %v42_v17 = vld [vmem:[#allocation5] sm:$0xff]  ;;  %v814_v20 = vsub.f32 %v39_v9, %v45_v13  ;;  %v816_v21 = vsub.f32 %v40_v10, %v46_v14  ;;  %v818_v22 = vsub.f32 %v41_v11, %v47_v15  ;;  %v55_v26 = vand.u32 2147483647, %v810_v18  ;;  %s600_s10 = sshll.u32 %s739_s9, 4  ;;  %s601_s10 = int_to_ptr.vmem [resolvable:$true] %s600_s10 }
  0x2a   :  { %v827_v24 = vsub.f32 %v36_v16, %v42_v17  ;;  %v56_v27 = vand.u32 2147483647, %v812_v19  ;;  %vm1528_vm1 = vcmp.lt.s32.totalorder %v780_v1, 112  ;;  %s706_s12 = scalar_lea.vmem %s601_s10, 128  ;;  %p711_p3 = scmp.lt.s32.totalorder %s601_s10, %s601_s10 }
  0x2b   :  { %104 = vrot.lane.b32.xlu1 %v787_v2, %s737_s5  ;;  %102 = vrot.lane.b32.xlu0 %v790_v3, %s737_s5  ;;  %v57_v28 = vand.u32 2147483647, %v814_v20  ;;  %v58_v29 = vand.u32 2147483647, %v816_v21  ;;  %v59_v30 = vand.u32 2147483647, %v818_v22  ;;  %p707_p2 = scmp.ne.s32.totalorder %s601_s10, %s706_s12  ;;  %p712_p4 = scmp.lt.s32.totalorder %s706_s12, %s706_s12 }
  0x2c   :  { %v54_v25 = vand.u32 2147483647, %v827_v24 }
  0x2d   :  { %v546_v33 = vsub.f32 %v55_v26, %v57_v28  ;;  %v552_v34 = vadd.f32 %v57_v28, %v55_v26  ;;  %v553_v35 = vmul.f32 2.0, %v58_v29  ;;  %v554_v36 = vmul.f32 2.0, %v59_v30  ;;  %p713_p5 = por %p712_p4, %p711_p3 }
  0x2e   :  { %v545_v31 = vsub.f32 %v54_v25, %v56_v27  ;;  %v551_v32 = vadd.f32 %v56_v27, %v54_v25  ;;  %v60_v50 = vadd.f32 %v55_v26, %v54_v25 }
  0x2f   :  { %336 = vrot.lane.b32.xlu1 %v787_v2, %s736_s4  ;;  %334 = vrot.lane.b32.xlu0 %v790_v3, %s736_s4  ;;  %v548_v38 = vmul.f32 %v546_v33, %v546_v33  ;;  %v556_v40 = vsub.f32 %v552_v34, %v554_v36  ;;  %p714_p6 = pnand %p713_p5, %p707_p2 }
  0x30   :  { %v547_v37 = vmul.f32 %v545_v31, %v545_v31  ;;  %v555_v39 = vsub.f32 %v551_v32, %v553_v35  ;;  %v61_v51 = vadd.f32 %v60_v50, %v56_v27 }
  0x31   :  { %v550_v42 = vmul.f32 4.0, %v548_v38  ;;  %v558_v44 = vmul.f32 %v556_v40, %v556_v40 }
  0x32   :  { %v549_v41 = vmul.f32 4.0, %v547_v37  ;;  %v557_v43 = vmul.f32 %v555_v39, %v555_v39  ;;  %v62_v52 = vadd.f32 %v61_v51, %v57_v28 }
  0x33   :  { %338 = vrot.lane.b32.xlu1 %v801_v4, %s736_s4  ;;  %106 = vrot.lane.b32.xlu0 %v801_v4, %s737_s5  ;;  %v560_v46 = vadd.f32 %v558_v44, %v550_v42 }
  0x34   :  { %v559_v45 = vadd.f32 %v557_v43, %v549_v41  ;;  %v63_v53 = vadd.f32 %v62_v52, %v58_v29 }
  0x35   :  { %v562_v48 = vmul.f32 %v560_v46, %v560_v46 }
  0x36   :  { %v561_v47 = vmul.f32 %v559_v45, %v559_v45  ;;  %v64_v54 = vadd.f32 %v63_v53, %v59_v30  ;;  %v909_v30 = vshrl.u32 %v74_v0, 7 }
  0x37   :  { %340 = vrot.lane.b32.xlu1 %v808_v12, %s736_s4  ;;  %108 = vrot.lane.b32.xlu0 %v808_v12, %s737_s5 }
  0x38   :  { %v563_v49 = vadd.f32 %v562_v48, %v561_v47  ;;  %v929_v40 = vsub.s32 0, %v909_v30 }
  0x3b   :  { %110 = vrot.lane.b32.xlu1 %v825_v23, %s737_s5 }
  0x3f   :  { %342 = vrot.lane.b32.xlu1 %v825_v23, %s736_s4 }
  0x43   :  { %81 = vrot.lane.b32.xlu1 %v827_v24, %s737_s5 }
  0x47   :  { %83 = vrot.lane.b32.xlu1 %v810_v18, %s737_s5 }
  0x4b   :  { %85 = vrot.lane.b32.xlu1 %v812_v19, %s737_s5 }
  0x4f   :  { %313 = vrot.lane.b32.xlu1 %v827_v24, %s736_s4 }
  0x53   :  { %315 = vrot.lane.b32.xlu1 %v810_v18, %s736_s4 }
  0x56   :  { %564 = vadd.xlane.f32.xlu0 %v563_v49 }
  0x57   :  { %317 = vrot.lane.b32.xlu1 %v812_v19, %s736_s4 }
  0x5b   :  { %319 = vrot.lane.b32.xlu1 %v814_v20, %s736_s4 }
  0x5f   :  { %89 = vrot.lane.b32.xlu1 %v816_v21, %s737_s5 }
  0x63   :  { %321 = vrot.lane.b32.xlu1 %v816_v21, %s736_s4 }
  0x67   :  { %91 = vrot.lane.b32.xlu1 %v818_v22, %s737_s5 }
  0x6b   :  { %323 = vrot.lane.b32.xlu1 %v818_v22, %s736_s4 }
  0x6c   :  { %87 = vrot.lane.b32.xlu0 %v814_v20, %s737_s5 }
  0x8f   :  { %65 = vadd.xlane.f32.xlu1 %v64_v54 }
  0x99   :  { %v863_v55 = vpop.permute.xlu1 %332  ;;  %v865_v56 = vpop.permute.xlu0 %100 }
  0x9d   :  { %v105_v57 = vpop.permute.xlu1 %104  ;;  %v103_v58 = vpop.permute.xlu0 %102 }
  0x9e   :  { %v115_v59 = vsel %vm1527_vm0, %v103_v58, %v105_v57  ;;  %v116_v60 = vsel %vm1527_vm0, %v865_v56, %v103_v58 }
  0x9f   :  { %vm118_vm2 = vcmp.lt.s32.totalorder %v780_v1, %v116_v60  ;;  %vm120_vm3 = vcmp.lt.s32.totalorder %v790_v3, %v115_v59  ;;  %v130_v28 = vsub.s32 %v116_v60, %v780_v1  ;;  %v131_v36 = vsub.s32 %v115_v59, %v790_v3 }
  0xa0   :  { %v119_v6 = vsel %vm118_vm2, %v780_v1, %v116_v60  ;;  %v121_v7 = vsel %vm120_vm3, %v790_v3, %v115_v59 }
  0xa1   :  { %v337_v61 = vpop.permute.xlu1 %336  ;;  %v335_v62 = vpop.permute.xlu0 %334  ;;  %v161_v9 = vsub.s32 0, %v119_v6  ;;  %v168_v10 = vsub.s32 0, %v121_v7  ;;  %v137_v0 = vsub.s32 0, %v130_v28  ;;  %v140_v46 = vsub.s32 0, %v131_v36 }
  0xa2   :  { %v348_v63 = vsel %vm1528_vm1, %v863_v55, %v335_v62  ;;  %v347_v8 = vsel %vm1528_vm1, %v335_v62, %v337_v61  ;;  %vm160_vm9 = vcmp.lt.s32.totalorder %v119_v6, 0  ;;  %vm167_vm10 = vcmp.lt.s32.totalorder %v121_v7, 0 }
  0xa3   :  { %vm350_vm4 = vcmp.lt.s32.totalorder %v780_v1, %v348_v63  ;;  %vm352_vm5 = vcmp.lt.s32.totalorder %v790_v3, %v347_v8  ;;  %v616_v15 = vmin.u32 %v161_v9, %v119_v6  ;;  %v617_v16 = vmin.u32 %v168_v10, %v121_v7 }
  0xa4   :  { %v887_v13 = vsel %vm350_vm4, %v780_v1, %v348_v63  ;;  %v897_v25 = vsel %vm352_vm5, %v790_v3, %v347_v8  ;;  %v362_v47 = vsub.s32 %v348_v63, %v780_v1  ;;  %v363_v50 = vsub.s32 %v347_v8, %v790_v3 }
  0xa5   :  { %v339_v5 = vpop.permute.xlu1 %338  ;;  %v393_v26 = vsub.s32 0, %v887_v13  ;;  %v107_v27 = vpop.permute.xlu0 %106  ;;  %v164_v31 = vand.u32 15, %v616_v15  ;;  %v171_v32 = vand.u32 15, %v617_v16  ;;  %v400_v33 = vsub.s32 0, %v897_v25 }
  0xa6   :  { %v892_v14 = vsel %vm1528_vm1, %v337_v61, %v339_v5  ;;  %v914_v34 = vsel %vm1527_vm0, %v105_v57, %v107_v27  ;;  %v950_v54 = vmin.u32 %v137_v0, %v130_v28  ;;  %v961_v61 = vmin.u32 %v140_v46, %v131_v36 }
  0xa7   :  { %vm354_vm6 = vcmp.lt.s32.totalorder %v787_v2, %v892_v14  ;;  %v634_v37 = vmin.u32 %v393_v26, %v887_v13  ;;  %vm122_vm8 = vcmp.lt.s32.totalorder %v787_v2, %v914_v34  ;;  %v165_v41 = vsub.s32 0, %v164_v31 }
  0xa8   :  { %v922_v38 = vsel %vm354_vm6, %v787_v2, %v892_v14  ;;  %v172_v42 = vsub.s32 0, %v171_v32  ;;  %v635_v43 = vmin.u32 %v400_v33, %v897_v25  ;;  %v943_v51 = vsel %vm122_vm8, %v787_v2, %v914_v34 }
  0xa9   :  { %v884_v11 = vpop.permute.xlu1 %340  ;;  %v109_v39 = vpop.permute.xlu0 %108  ;;  %v407_v44 = vsub.s32 0, %v922_v38  ;;  %v396_v48 = vand.u32 255, %v634_v37  ;;  %v954_v57 = vsel %vm160_vm9, %v165_v41, %v164_v31  ;;  %v175_v63 = vsub.s32 0, %v943_v51 }
  0xaa   :  { %v906_v29 = vsel %vm1528_vm1, %v339_v5, %v884_v11  ;;  %v948_v53 = vsel %vm1527_vm0, %v107_v27, %v109_v39  ;;  %v956_v3 = vsel %vm167_vm10, %v172_v42, %v171_v32  ;;  %v403_v58 = vand.u32 255, %v635_v43 }
  0xab   :  { %vm356_vm7 = vcmp.lt.s32.totalorder %v801_v4, %v906_v29  ;;  %vm124_vm11 = vcmp.lt.s32.totalorder %v801_v4, %v948_v53  ;;  %v636_v59 = vmin.u32 %v407_v44, %v922_v38  ;;  %v397_v62 = vsub.s32 0, %v396_v48 }
  0xac   :  { %v938_v49 = vsel %vm356_vm7, %v801_v4, %v906_v29  ;;  %v369_v6 = vsub.s32 0, %v362_v47  ;;  %v372_v7 = vsub.s32 0, %v363_v50  ;;  %vm392_vm12 = vcmp.lt.s32.totalorder %v887_v13, 0 }
  0xad   :  { %v894_v17 = vpop.permute.xlu1 %110  ;;  %v414_v52 = vsub.s32 0, %v938_v49  ;;  %v968_v8 = vsel %vm124_vm11, %v801_v4, %v948_v53  ;;  %vm202_vm13 = vcmp.ne.s32.totalorder %v954_v57, 0  ;;  %vm203_vm14 = vcmp.ne.s32.totalorder %v956_v3, 0 }
  0xae   :  { %vm208_vm15 = vcmp.lt.s32.totalorder %v954_v57, 0  ;;  %v976_v9 = vsel %vm1527_vm0, %v109_v39, %v894_v17  ;;  %vm209_vm2 = vcmp.lt.s32.totalorder %v956_v3, 0  ;;  %v404_v10 = vsub.s32 0, %v403_v58 }
  0xaf   :  { %v637_v5 = vmin.u32 %v414_v52, %v938_v49  ;;  %v410_v15 = vand.u32 255, %v636_v59  ;;  %vm126_vm3 = vcmp.lt.s32.totalorder %v808_v12, %v976_v9  ;;  %v983_v16 = vsel %vm392_vm12, %v397_v62, %v396_v48  ;;  %vm987_vm4 = vmand %vm208_vm15, %vm202_vm13 }
  0xb0   :  { %v618_v26 = vmin.u32 %v175_v63, %v943_v51  ;;  %v182_v28 = vsub.s32 0, %v968_v8  ;;  %v220_v32 = vadd.s32 16, %v954_v57  ;;  %v993_v33 = vadd.s32 16, %v956_v3  ;;  %vm1000_vm6 = vmand %vm209_vm2, %vm203_vm14 }
  0xb1   :  { %v916_v35 = vpop.permute.xlu1 %342  ;;  %v417_v27 = vand.u32 255, %v637_v5  ;;  %v995_v36 = vmin.u32 %v369_v6, %v362_v47  ;;  %vm399_vm5 = vcmp.lt.s32.totalorder %v897_v25, 0  ;;  %v1004_v0 = vmin.u32 %v372_v7, %v363_v50 }
  0xb2   :  { %v364_v39 = vsub.s32 %v892_v14, %v787_v2  ;;  %vm406_vm7 = vcmp.lt.s32.totalorder %v922_v38, 0  ;;  %v1011_v41 = vsel %vm126_vm3, %v808_v12, %v976_v9  ;;  %v1013_v42 = vsel %vm399_vm5, %v404_v10, %v403_v58 }
  0xb3   :  { %vm434_vm8 = vcmp.ne.s32.totalorder %v983_v16, 0  ;;  %v411_v25 = vsub.s32 0, %v410_v15  ;;  %v1020_v43 = vsel %vm1527_vm0, %v894_v17, %v865_v56  ;;  %vm440_vm9 = vcmp.lt.s32.totalorder %v983_v16, 0 }
  0xb4   :  { %v178_v14 = vand.u32 15, %v618_v26  ;;  %v418_v46 = vsub.s32 0, %v417_v27  ;;  %v1026_v47 = vmin.u32 %v182_v28, %v968_v8  ;;  %v226_v48 = vsel %vm987_vm4, %v220_v32, %v954_v57  ;;  %vm1046_vm14 = vmand %vm440_vm9, %vm434_vm8 }
  0xb5   :  { %v933_v45 = vpop.permute.xlu1 %81  ;;  %v227_v50 = vsel %vm1000_vm6, %v993_v33, %v956_v3  ;;  %vm413_vm10 = vcmp.lt.s32.totalorder %v938_v49, 0  ;;  %v189_v56 = vsub.s32 0, %v1011_v41  ;;  %v452_v17 = vadd.s32 256, %v983_v16 }
  0xb6   :  { %v375_v52 = vsub.s32 0, %v364_v39  ;;  %v132_v58 = vsub.s32 %v914_v34, %v787_v2  ;;  %vm128_vm11 = vcmp.lt.s32.totalorder %v825_v23, %v1020_v43  ;;  %vm435_vm12 = vcmp.ne.s32.totalorder %v1013_v42, 0 }
  0xb7   :  { %vm441_vm13 = vcmp.lt.s32.totalorder %v1013_v42, 0  ;;  %v453_v49 = vadd.s32 256, %v1013_v42  ;;  %v1053_v3 = vsel %vm406_vm7, %v411_v25, %v410_v15  ;;  %v179_v34 = vsub.s32 0, %v178_v14 }
  0xb8   :  { %v1057_v59 = vsel %vm413_vm10, %v418_v46, %v417_v27  ;;  %v185_v62 = vand.u32 15, %v1026_v47  ;;  %v344_v63 = vsel %vm1528_vm1, %v884_v11, %v916_v35  ;;  %v1066_v5 = vsel %vm128_vm11, %v825_v23, %v1020_v43  ;;  %vm1089_vm2 = vmand %vm441_vm13, %vm435_vm12 }
  0xb9   :  { %v959_v60 = vpop.permute.xlu1 %83  ;;  %v1069_v38 = vmin.u32 %v189_v56, %v1011_v41  ;;  %v1075_v6 = vsel %vm1528_vm1, %v916_v35, %v863_v55  ;;  %vm358_vm15 = vcmp.lt.s32.totalorder %v808_v12, %v344_v63  ;;  %v458_v7 = vsel %vm1046_vm14, %v452_v17, %v983_v16 }
  0xba   :  { %v1081_v11 = vmin.u32 %v375_v52, %v364_v39  ;;  %v143_v10 = vsub.s32 0, %v132_v58  ;;  %v365_v15 = vsub.s32 %v906_v29, %v801_v4  ;;  %vm436_vm3 = vcmp.ne.s32.totalorder %v1053_v3, 0 }
  0xbb   :  { %vm174_vm4 = vcmp.lt.s32.totalorder %v943_v51, 0  ;;  %v1096_v55 = vsel %vm358_vm15, %v808_v12, %v344_v63  ;;  %vm360_vm5 = vcmp.lt.s32.totalorder %v825_v23, %v1075_v6  ;;  %vm442_vm6 = vcmp.lt.s32.totalorder %v1053_v3, 0 }
  0xbc   :  { %v1103_v29 = vsel %vm174_vm4, %v179_v34, %v178_v14  ;;  %vm437_vm7 = vcmp.ne.s32.totalorder %v1057_v59, 0  ;;  %v196_v16 = vsub.s32 0, %v1066_v5  ;;  %vm443_vm8 = vcmp.lt.s32.totalorder %v1057_v59, 0  ;;  %vm1129_vm11 = vmand %vm442_vm6, %vm436_vm3 }
  0xbd   :  { %v981_v13 = vpop.permute.xlu1 %85  ;;  %v186_v27 = vsub.s32 0, %v185_v62  ;;  %v192_v51 = vand.u32 15, %v1069_v38  ;;  %v421_v28 = vsub.s32 0, %v1096_v55  ;;  %vm1110_vm9 = vcmp.ne.s32.totalorder %v226_v48, 15 }
  0xbe   :  { %v459_v32 = vsel %vm1089_vm2, %v453_v49, %v1013_v42  ;;  %v378_v33 = vsub.s32 0, %v365_v15  ;;  %v133_v37 = vsub.s32 %v948_v53, %v801_v4  ;;  %v1121_v39 = vsel %vm360_vm5, %v825_v23, %v1075_v6  ;;  %vm1147_vm2 = vmand %vm443_vm8, %vm437_vm7 }
  0xbf   :  { %vm1123_vm10 = vcmp.ne.s32.totalorder %v227_v50, 15  ;;  %v454_v42 = vadd.s32 256, %v1053_v3  ;;  %v1134_v46 = vmin.u32 %v143_v10, %v132_v58  ;;  %v455_v4 = vadd.s32 256, %v1057_v59 }
  0xc0   :  { %vm181_vm12 = vcmp.lt.s32.totalorder %v968_v8, 0  ;;  %vm154_vm13 = vcmp.eq.s32.totalorder %v950_v54, 1  ;;  %vm204_vm14 = vcmp.ne.s32.totalorder %v1103_v29, 0  ;;  %vm210_vm15 = vcmp.lt.s32.totalorder %v1103_v29, 0 }
  0xc1   :  { %v1022_v44 = vpop.permute.xlu1 %313  ;;  %v1152_v48 = vmin.u32 %v196_v16, %v1066_v5  ;;  %v638_v8 = vmin.u32 %v421_v28, %v1096_v55  ;;  %vm155_vm3 = vcmp.eq.s32.totalorder %v961_v61, 1  ;;  %vm1156_vm4 = vcmp.lt.s32.totalorder %v458_v7, 240  ;;  %vm1188_vm7 = vmand %vm210_vm15, %vm204_vm14 }
  0xc2   :  { %v1160_v56 = vsel %vm181_vm12, %v186_v27, %v185_v62  ;;  %v134_v17 = vsub.s32 %v976_v9, %v808_v12  ;;  %v193_v52 = vsub.s32 0, %v192_v51  ;;  %v428_v58 = vsub.s32 0, %v1121_v39 }
  0xc3   :  { %v1165_v57 = vmin.u32 %v378_v33, %v365_v15  ;;  %v146_v49 = vsub.s32 0, %v133_v37  ;;  %v135_v34 = vsub.s32 %v1020_v43, %v825_v23  ;;  %v424_v38 = vand.u32 255, %v638_v8 }
  0xc4   :  { %vm1170_vm6 = vcmp.lt.s32.totalorder %v459_v32, 240  ;;  %v460_v9 = vsel %vm1129_vm11, %v454_v42, %v1053_v3  ;;  %v222_v62 = vadd.s32 16, %v1103_v29  ;;  %v461_v10 = vsel %vm1147_vm2, %v455_v4, %v1057_v59 }
  0xc5   :  { %v1055_v2 = vpop.permute.xlu1 %315  ;;  %v366_v15 = vsub.s32 %v344_v63, %v808_v12  ;;  %vm205_vm8 = vcmp.ne.s32.totalorder %v1160_v56, 0  ;;  %vm211_vm11 = vcmp.lt.s32.totalorder %v1160_v56, 0  ;;  %vm188_vm12 = vcmp.lt.s32.totalorder %v1011_v41, 0 }
  0xc6   :  { %v199_v3 = vand.u32 15, %v1152_v48  ;;  %v149_v12 = vsub.s32 0, %v134_v17  ;;  %v1197_v59 = vsel %vm188_vm12, %v193_v52, %v192_v51  ;;  %v425_v63 = vsub.s32 0, %v424_v38  ;;  %vm1223_vm14 = vmand %vm211_vm11, %vm205_vm8 }
  0xc7   :  { %v1200_v16 = vmin.u32 %v428_v58, %v1121_v39  ;;  %vm1203_vm15 = vcmp.lt.s32.totalorder %v460_v9, 240  ;;  %v1207_v28 = vmin.u32 %v146_v49, %v133_v37  ;;  %v223_v41 = vadd.s32 16, %v1160_v56  ;;  %vm1239_vm8 = vmand %vm154_vm13, %vm1110_vm9 }
  0xc8   :  { %v152_v32 = vsub.s32 0, %v135_v34  ;;  %vm420_vm2 = vcmp.lt.s32.totalorder %v1096_v55, 0  ;;  %v228_v51 = vsel %vm1188_vm7, %v222_v62, %v1103_v29  ;;  %vm1215_vm5 = vcmp.lt.s32.totalorder %v461_v10, 240  ;;  %vm1258_vm9 = vmand %vm155_vm3, %vm1123_vm10 }
  0xc9   :  { %v1100_v35 = vpop.permute.xlu1 %317  ;;  %v367_v55 = vsub.s32 %v1075_v6, %v825_v23  ;;  %v381_v14 = vsub.s32 0, %v366_v15  ;;  %v200_v42 = vsub.s32 0, %v199_v3  ;;  %vm206_vm7 = vcmp.ne.s32.totalorder %v1197_v59, 0 }
  0xca   :  { %vm212_vm12 = vcmp.lt.s32.totalorder %v1197_v59, 0  ;;  %v97_v29 = vsel %vm1527_vm0, %v959_v60, %v981_v13  ;;  %v1243_v23 = vmin.u32 %v149_v12, %v134_v17  ;;  %v1245_v6 = vsel %vm420_vm2, %v425_v63, %v424_v38 }
  0xcb   :  { %v431_v47 = vand.u32 255, %v1200_v16  ;;  %v98_v48 = vsel %vm1527_vm0, %v933_v45, %v959_v60  ;;  %v229_v31 = vsel %vm1223_vm14, %v223_v41, %v1160_v56  ;;  %v1265_v17 = vmin.u32 %v152_v32, %v135_v34  ;;  %vm1269_vm11 = vmand %vm212_vm12, %vm206_vm7 }
  0xcc   :  { %vm195_vm13 = vcmp.lt.s32.totalorder %v1066_v5, 0  ;;  %v224_v60 = vadd.s32 16, %v1197_v59  ;;  %v1273_v25 = vmin.u32 %v381_v14, %v366_v15  ;;  %v384_v61 = vsub.s32 0, %v367_v55 }
  0xcd   :  { %v1138_v53 = vpop.permute.xlu1 %319  ;;  %v257_v58 = vsub.f32 %v97_v29, %v810_v18  ;;  %v330_v56 = vsel %vm1528_vm1, %v1022_v44, %v1055_v2  ;;  %vm1563_vm10 = vcmp.eq.s32.totalorder %v995_v36, 16  ;;  %vm1288_vm2 = vcmp.ne.s32.totalorder %v228_v51, 15 }
  0xce   :  { %vm1284_vm3 = vmand %vm1563_vm10, %vm1156_vm4  ;;  %v1292_v34 = vsel %vm195_vm13, %v200_v42, %v199_v3  ;;  %vm438_vm14 = vcmp.ne.s32.totalorder %v1245_v6, 0  ;;  %vm444_vm12 = vcmp.lt.s32.totalorder %v1245_v6, 0  ;;  %v256_v38 = vsub.f32 %v98_v48, %v827_v24 }
  0xcf   :  { %vm158_vm7 = vcmp.eq.s32.totalorder %v1243_v23, 1  ;;  %vm427_vm0 = vcmp.lt.s32.totalorder %v1121_v39, 0  ;;  %v432_v36 = vsub.s32 0, %v431_v47  ;;  %v738_v50 = vmov 0.0  }
  0xd0   :  { %v622_v9 = vsel %vm1239_vm8, 1.0, %v738_v50  ;;  %vm1568_vm4 = vcmp.eq.s32.totalorder %v1004_v0, 16  ;;  %vm156_vm10 = vcmp.eq.s32.totalorder %v1134_v46, 1  ;;  %vm1311_vm1 = vcmp.ne.s32.totalorder %v229_v31, 15 }
  0xd1   :  { %v1182_v43 = vpop.permute.xlu1 %89  ;;  %vm1306_vm13 = vmand %vm1568_vm4, %vm1170_vm6  ;;  %v230_v15 = vsel %vm1269_vm11, %v224_v60, %v1197_v59  ;;  %v456_v26 = vadd.s32 256, %v1245_v6  ;;  %v623_v0 = vsel %vm1258_vm9, 1.0, %v738_v50  ;;  %v488_v7 = vsub.f32 %v330_v56, %v827_v24 }
  0xd2   :  { %v1324_v3 = vadd.s32 16, %v1292_v34  ;;  %v1326_v12 = vmin.u32 %v384_v61, %v367_v55  ;;  %vm1332_vm6 = vmand %vm444_vm12, %vm438_vm14  ;;  %v263_v59 = vand.u32 2147483647, %v257_v58  ;;  %v640_v16 = vsel %vm1284_vm3, 1.0, %v738_v50 }
  0xd3   :  { %vm157_vm8 = vcmp.eq.s32.totalorder %v1207_v28, 1  ;;  %vm390_vm9 = vcmp.eq.s32.totalorder %v1273_v25, 16  ;;  %v271_v24 = vrot.slane %v622_v9, %v929_v40  ;;  %v262_v32 = vand.u32 2147483647, %v256_v38 }
  0xd4   :  { %vm1575_vm11 = vcmp.lt.s32.totalorder %v780_v1, 112  ;;  %vm1576_vm14 = vcmp.eq.s32.totalorder %v1081_v11, 16  ;;  %vm1354_vm3 = vcmp.ne.s32.totalorder %v230_v15, 15  ;;  %v1360_v14 = vsel %vm427_vm0, %v432_v36, %v431_v47 }
  0xd5   :  { %v1252_v8 = vpop.permute.xlu1 %321  ;;  %v329_v51 = vsel %vm1575_vm11, %v1055_v2, %v1100_v35  ;;  %vm1350_vm12 = vmand %vm1576_vm14, %vm1203_vm15  ;;  %v275_v42 = vrot.slane %v623_v0, %v929_v40  ;;  %vm1582_vm15 = vcmp.eq.s32.totalorder %v1165_v57, 16  ;;  %v462_v39 = vsel %vm1332_vm6, %v456_v26, %v1245_v6 }
  0xd6   :  { %vm1581_vm4 = vmmov %vm1575_vm11  ;;  %v503_v27 = vrot.slane %v640_v16, %v929_v40  ;;  %v494_v29 = vand.u32 2147483647, %v488_v7  ;;  %v641_v4 = vsel %vm1306_vm13, 1.0, %v738_v50  ;;  %v489_v33 = vsub.f32 %v329_v51, %v810_v18 }
  0xd7   :  { %v328_v2 = vsel %vm1581_vm4, %v1100_v35, %v1138_v53  ;;  %vm1371_vm11 = vmand %vm1582_vm15, %vm1215_vm5  ;;  %v293_v35 = vmul.f32 %v275_v42, %v263_v59  ;;  %vm207_vm0 = vcmp.ne.s32.totalorder %v1292_v34, 0  ;;  %vm213_vm5 = vcmp.lt.s32.totalorder %v1292_v34, 0 }
  0xd8   :  { %vm159_vm14 = vcmp.eq.s32.totalorder %v1265_v17, 1  ;;  %v457_v57 = vadd.s32 256, %v1360_v14  ;;  %v292_v47 = vmul.f32 %v271_v24, %v262_v32  ;;  %v642_v6 = vsel %vm1350_vm12, 1.0, %v738_v50  ;;  %vm1391_vm6 = vmand %vm213_vm5, %vm207_vm0 }
  0xd9   :  { %v92_v41 = vpop.permute.xlu1 %91  ;;  %v490_v48 = vsub.f32 %v328_v2, %v812_v19  ;;  %v643_v18 = vsel %vm1371_vm11, 1.0, %v738_v50  ;;  %vm1587_vm13 = vmmov %vm1581_vm4  ;;  %vm439_vm12 = vcmp.ne.s32.totalorder %v1360_v14, 0  ;;  %vm445_vm4 = vcmp.lt.s32.totalorder %v1360_v14, 0 }
  0xda   :  { %v327_v31 = vsel %vm1587_vm13, %v1138_v53, %v1252_v8  ;;  %vm1410_vm15 = vmand %vm158_vm7, %vm1354_vm3  ;;  %vm1414_vm11 = vcmp.lt.s32.totalorder %v462_v39, 240  ;;  %v524_v53 = vmul.f32 %v503_v27, %v494_v29  ;;  %v507_v56 = vrot.slane %v641_v4, %v929_v40 }
  0xdb   :  { %vm1592_vm0 = vcmp.lt.s32.totalorder %v780_v1, 127  ;;  %vm1426_vm5 = vmand %vm156_vm10, %vm1288_vm2  ;;  %v298_v38 = vadd.f32 %v293_v35, %v292_v47  ;;  %v495_v36 = vand.u32 2147483647, %v489_v33  ;;  %v511_v9 = vrot.slane %v642_v6, %v929_v40 }
  0xdc   :  { %v94_v5 = vsel %vm1592_vm0, %v1182_v43, %v92_v41  ;;  %v231_v62 = vsel %vm1391_vm6, %v1324_v3, %v1292_v34  ;;  %vm391_vm7 = vcmp.eq.s32.totalorder %v1326_v12, 16  ;;  %v496_v15 = vand.u32 2147483647, %v490_v48  ;;  %vm1595_vm2 = vmmov %vm1587_vm13 }
  0xdd   :  { %v324_v60 = vpop.permute.xlu1 %323  ;;  %v515_v49 = vrot.slane %v643_v18, %v929_v40  ;;  %v491_v46 = vsub.f32 %v327_v31, %v814_v20  ;;  %vm1445_vm10 = vmand %vm445_vm4, %vm439_vm12  ;;  %v260_v3 = vsub.f32 %v94_v5, %v816_v21  ;;  %v624_v28 = vsel %vm1426_vm5, 1.0, %v738_v50 }
  0xde   :  { %v326_v26 = vsel %vm1595_vm2, %v1252_v8, %v324_v60  ;;  %vm1453_vm3 = vmand %vm157_vm8, %vm1311_vm1  ;;  %v626_v8 = vsel %vm1410_vm15, 1.0, %v738_v50  ;;  %vm237_vm12 = vcmp.ne.s32.totalorder %v231_v62, 15  ;;  %v525_v24 = vmul.f32 %v507_v56, %v495_v36 }
  0xdf   :  { %vm1600_vm6 = vmmov %vm1592_vm0  ;;  %v492_v59 = vsub.f32 %v326_v26, %v816_v21  ;;  %v497_v32 = vand.u32 2147483647, %v491_v46  ;;  %v279_v21 = vrot.slane %v624_v28, %v929_v40  ;;  %v287_v55 = vrot.slane %v626_v8, %v929_v40 }
  0xe0   :  { %v99_v7 = vsel %vm1600_vm6, %v92_v41, %v933_v45  ;;  %vm474_vm1 = vmand %vm390_vm9, %vm1414_vm11  ;;  %v463_v41 = vsel %vm1445_vm10, %v457_v57, %v1360_v14  ;;  %v266_v42 = vand.u32 2147483647, %v260_v3  ;;  %v530_v27 = vadd.f32 %v525_v24, %v524_v53 }
  0xe1   :  { %vm1601_vm8 = vmmov %vm1592_vm0  ;;  %v261_v51 = vsub.f32 %v99_v7, %v818_v22  ;;  %vm469_vm15 = vcmp.lt.s32.totalorder %v463_v41, 240  ;;  %v498_v2 = vand.u32 2147483647, %v492_v59  ;;  %v527_v29 = vmul.f32 %v515_v49, %v497_v32 }
  0xe2   :  { %vm1602_vm13 = vmmov %vm1592_vm0  ;;  %v296_v6 = vmul.f32 %v287_v55, %v266_v42  ;;  %vm573_vm5 = vcmask 7168  }
  0xe3   :  { %v1402_v52 = vpop.xlane.xlu0 %564  ;;  %vm243_vm9 = vmand %vm159_vm14, %vm237_vm12  ;;  %v267_v35 = vand.u32 2147483647, %v261_v51 }
  0xe4   :  { %660 = vrsqrt.f32 %v1402_v52  ;;  %vm1603_vm4 = vmmov %vm1595_vm2  ;;  %v627_v17 = vsel %vm243_vm9, 1.0, %v738_v50  ;;  %vm568_vm11 = vcmp.eq.f32.partialorder %v1402_v52, inf  ;;  %vm570_vm0 = vcmp.eq.f32.partialorder %v1402_v52, 0.0 }
  0xe5   :  { %v331_v14 = vsel %vm1603_vm4, %v324_v60, %v1022_v44  ;;  %vm475_vm14 = vmand %vm391_vm7, %vm469_vm15  ;;  %v291_v54 = vrot.slane %v627_v17, %v929_v40  ;;  %vm587_vm7 = vcmp.eq.s32.totalorder %v909_v30, 1  ;;  %vm586_vm2 = vcmp.eq.s32.totalorder %v909_v30, 0 }
  0xe6   :  { %v493_v33 = vsub.f32 %v331_v14, %v818_v22  ;;  %v645_v31 = vsel %vm475_vm14, 1.0, %v738_v50 }
  0xe7   :  { %v88_v63 = vpop.permute.xlu0 %87  ;;  %v297_v61 = vmul.f32 %v291_v54, %v267_v35  ;;  %v523_v5 = vrot.slane %v645_v31, %v929_v40 }
  0xe8   :  { %v95_v10 = vsel %vm1601_vm8, %v88_v63, %v1182_v43  ;;  %v96_v45 = vsel %vm1602_vm13, %v981_v13, %v88_v63  ;;  %v625_v43 = vsel %vm1453_vm3, 1.0, %v738_v50  ;;  %v644_v13 = vsel %vm474_vm1, 1.0, %v738_v50 }
  0xe9   :  { %v258_v16 = vsub.f32 %v96_v45, %v812_v19  ;;  %v259_v25 = vsub.f32 %v95_v10, %v814_v20  ;;  %v526_v20 = vmul.f32 %v511_v9, %v496_v15  ;;  %v283_v11 = vrot.slane %v625_v43, %v929_v40 }
  0xea   :  { %v519_v4 = vrot.slane %v644_v13, %v929_v40  ;;  %v499_v60 = vand.u32 2147483647, %v493_v33  ;;  %v571_v9 = vand.u32 2147483648, %v1402_v52 }
  0xeb   :  { %v264_v37 = vand.u32 2147483647, %v258_v16  ;;  %v265_v19 = vand.u32 2147483647, %v259_v25  ;;  %v531_v1 = vadd.f32 %v530_v27, %v526_v20 }
  0xec   :  { %v528_v48 = vmul.f32 %v519_v4, %v498_v2  ;;  %v529_v23 = vmul.f32 %v523_v5, %v499_v60 }
  0xed   :  { %v294_v39 = vmul.f32 %v279_v21, %v264_v37  ;;  %v295_v57 = vmul.f32 %v283_v11, %v265_v19  ;;  %v532_v53 = vadd.f32 %v531_v1, %v527_v29 }
  0xee   :  { %v661_v44 = vpop.eup %660 }
  0xef   :  { %v299_v47 = vadd.f32 %v298_v38, %v294_v39  ;;  %v567_v22 = vmul.f32 %v661_v44, %v1402_v52  ;;  %v533_v12 = vadd.f32 %v532_v53, %v528_v48 }
  0xf1   :  { %v300_v18 = vadd.f32 %v299_v47, %v295_v57  ;;  %v569_v38 = vsel %vm568_vm11, %v1402_v52, %v567_v22  ;;  %v534_v36 = vadd.f32 %v533_v12, %v529_v23 }
  0xf2   :  { %v572_v50 = vsel %vm570_vm0, %v571_v9, %v569_v38 }
  0xf3   :  { %v301_v58 = vadd.f32 %v300_v18, %v296_v6  ;;  %v574_v62 = vsel %vm573_vm5, %v572_v50, 0.0 }
  0xf5   :  { %v302_v56 = vadd.f32 %v301_v58, %v297_v61 }
  0xf7   :  { %303 = vadd.xlane.f32.xlu0 %v302_v56 }
  0xfb   :  { %535 = vadd.xlane.f32.xlu0 %v534_v36 }
  0xff   :  { %575 = vadd.xlane.f32.xlu0 %v574_v62 }
 0x11c   :  { %v66_v15 = vpop.xlane.xlu1 %65 }
 0x11d   :  { %v67_v49 = vrot.slane %v66_v15, 4 }
 0x11f   :  { %v68_v40 = vadd.f32 %v67_v49, %v66_v15 }
 0x121   :  { %v69_v46 = vrot.slane %v68_v40, 2 }
 0x123   :  { %v70_v26 = vadd.f32 %v69_v46, %v68_v40 }
 0x125   :  { %v71_v0 = vrot.slane %v70_v26, 1 }
 0x127   :  { %v72_v34 = vadd.f32 %v71_v0, %v70_v26 }
 0x129   :  { %646 = vpush %v72_v34 }
 0x15a   :  { %s647_s1 = spop %646 }
 0x15b   :  { %v591_v42 = vstv %s647_s1 }
 0x184   :  { %v304_v8 = vpop.xlane.xlu0 %303 }
 0x185   :  { %v305_v7 = vrot.slane %v304_v8, 4 }
 0x187   :  { %v306_v3 = vadd.f32 %v305_v7, %v304_v8 }
 0x188   :  { %v536_v63 = vpop.xlane.xlu0 %535 }
 0x189   :  { %v307_v28 = vrot.slane %v306_v3, 2  ;;  %v537_v10 = vrot.slane %v536_v63, 4 }
 0x18b   :  { %v538_v52 = vadd.f32 %v537_v10, %v536_v63  ;;  %v308_v45 = vadd.f32 %v307_v28, %v306_v3 }
 0x18c   :  { %v576_v59 = vpop.xlane.xlu0 %575 }
 0x18d   :  { %v539_v16 = vrot.slane %v538_v52, 2  ;;  %v577_v25 = vrot.slane %v576_v59, 4  ;;  %v309_v41 = vrot.slane %v308_v45, 1 }
 0x18f   :  { %v578_v24 = vadd.f32 %v577_v25, %v576_v59  ;;  %v310_v32 = vadd.f32 %v309_v41, %v308_v45  ;;  %v540_v51 = vadd.f32 %v539_v16, %v538_v52 }
 0x191   :  { %v579_v43 = vrot.slane %v578_v24, 2  ;;  %648 = vpush %v310_v32  ;;  %v541_v13 = vrot.slane %v540_v51, 1 }
 0x193   :  { %v580_v21 = vadd.f32 %v579_v43, %v578_v24  ;;  %v542_v37 = vadd.f32 %v541_v13, %v540_v51 }
 0x195   :  { %650 = vpush %v542_v37  ;;  %v581_v19 = vrot.slane %v580_v21, 1 }
 0x197   :  { %v582_v20 = vadd.f32 %v581_v19, %v580_v21 }
 0x199   :  { %652 = vpush %v582_v20 }
 0x1c2   :  { %s649_s6 = spop %648 }
 0x1c6   :  { %s651_s7 = spop %650 }
 0x1c7   :  { %s544_s8 = sadd.f32 %s651_s7, %s649_s6 }
 0x1c9   :  { %v588_v55 = vstv %s544_s8 }
 0x1ca   :  { %s653_s11 = spop %652 }
 0x1cb   :  { %v589_v14 = vstv %s653_s11 }
 0x1cc   :  { %v590_v2 = vsel %vm587_vm7, %v588_v55, %v589_v14 }
 0x1cd   :  { %v592_v11 = vsel %vm586_vm2, %v591_v42, %v590_v2 }
 0x1ce   :  { %593 = vst [vmem:[#allocation7] sm:$0xff] %v592_v11 }
 0x1cf   :  { %717 = shalt.err (!%p714_p6)
}
 0x1d0   :  { %s718_s15 = scalar_lea.hbm %s1526_s2, 128 }
 0x1d1   :  { %p719_p7 = scmp.ne.s32.totalorder %s1526_s2, %s718_s15  ;;  %p722_p8 = scmp.lt.u32.totalorder %s718_s15, %s1526_s2 }
 0x1d3   :  { %p724_p9 = pnand %p722_p8, %p719_p7 }
 0x1d5   :  { %727 = shalt.err (!%p724_p9)
}
 0x1d6   :  { %603 = dma.vmem_to_hbm [thread:$0]  %s601_s10, 128, %s1526_s2, [#allocation4]  }
 0x1d7   :  { %732 = dma.done.wait [#allocation4], 128  }
 0x1d8   :  { %733 = vsyncadd [#allocation4], 4294967168 }
 0x1d9   :  { %607 = vsyncpa [#allocation3], 1 }
 0x1da   :  { %608 = vsyncpa [#allocation6], 1 }
 0x1db   :  { %609 = vsyncpa [#allocation4], 1 }

</bundles_post_ra>
